<compile_context>
chip_gen: v6e
topology: v6e:2x2x1
jax: 0.10.0
libtpu: 0.0.40
codegen_flags: <defaults>
</compile_context>

<pallas_src>
import functools

import jax
import jax.numpy as jnp
from jax import lax
from jax.experimental import pallas as pl
from jax.experimental.pallas import tpu as pltpu

NEG_SLOPE = 0.01  # nn.LeakyReLU default negative_slope
BN_EPS = 1e-5     # nn.BatchNorm2d default eps


def _round_up(v, m):
    return (v + m - 1) // m * m


# ------------------------------ Pallas kernel ------------------------------ #

def _taps_3x3(z, masks_ref, width):
    """In-register im2col for a 3x3 / pad=1 conv.

    z:         (C, M) f32 — one image; channels on sublanes, flattened H*W on lanes.
    masks_ref: (9, 1, M)  — 1.0 where tap k = dy*3+dx stays inside the image, else 0.
    Returns    (9*C, M) f32, tap-major rows (row = k*C + c).
    """
    C, M = z.shape
    G = _round_up(width + 1, 128)          # lane-aligned guard band (aligned concat)
    zeros = jnp.zeros((C, G), z.dtype)
    zw = jnp.concatenate([zeros, z, zeros], axis=1)   # (C, M + 2G), all 128-multiples

    taps = []
    k = 0
    for dy in range(3):
        for dx in range(3):
            off = (dy - 1) * width + (dx - 1)     # flat shift on the H*W axis
            if off == 0:
                taps.append(z)                    # centre tap: no shift, no mask
            else:
                t = zw[:, G + off:G + off + M]    # static lane slice (shifted view)
                taps.append(t * masks_ref[k])     # zero out cross-row / padding reads
            k += 1
    # All pieces are (C, M) f32 with C a multiple of 8 -> aligned sublane concat.
    return jnp.concatenate(taps, axis=0)          # (9*C, M)


def conv_block_kernel(x_ref, w1_ref, b1_ref, w2_ref, b2_ref, masks_ref, o_ref, *,
                      width):
    """Fused Conv3x3+BN+LeakyReLU -> (Dropout=id) -> Conv3x3+BN+LeakyReLU, one image.

    x_ref:  (1, Cin_p, M)  f32    planar image, M = H*W on lanes
    w1_ref: (Cout_p, 9*Cin_p)  bf16   BN1 scale folded in, tap-major columns
    b1_ref: (Cout_p, 1)        f32    folded BN1 bias
    w2_ref: (Cout_p, 9*Cout_p) bf16
    b2_ref: (Cout_p, 1)        f32
    masks_ref: (9, 1, M)       f32    static 3x3 border masks
    o_ref:  (1, Cout_p, M)     f32
    """
    x = x_ref[0]                                            # (Cin_p, M) f32

    # ---- conv1 (+ folded BN1) + LeakyReLU ----
    p1 = _taps_3x3(x, masks_ref, width)                     # (9*Cin_p, M) f32
    y1 = jnp.dot(w1_ref[...], p1.astype(jnp.bfloat16),      # bf16 MXU, f32 accumulate
                 preferred_element_type=jnp.float32)        # (Cout_p, M)
    y1 = y1 + b1_ref[...]
    y1 = jnp.where(y1 >= 0.0, y1, NEG_SLOPE * y1)           # f32 VPU epilogue

    # TODO(synk): nn.Dropout is identity in inference mode; train-mode stochastic
    # masking (and batch-statistic BN) is not implemented.

    # ---- conv2 (+ folded BN2) + LeakyReLU ----  (y1 stays in VMEM/vregs)
    p2 = _taps_3x3(y1, masks_ref, width)                    # (9*Cout_p, M) f32
    y2 = jnp.dot(w2_ref[...], p2.astype(jnp.bfloat16),
                 preferred_element_type=jnp.float32)
    y2 = y2 + b2_ref[...]
    y2 = jnp.where(y2 >= 0.0, y2, NEG_SLOPE * y2)

    o_ref[0] = y2.astype(o_ref.dtype)                       # lane-dense (Cout_p, 256) store


# ------------------------------- wrapper ----------------------------------- #

def make_tap_masks(H, W):
    """(9, 1, H*W) f32; mask[k, 0, m] = 1 iff tap k=(dy*3+dx) of pixel m is in-image."""
    h = jnp.arange(H * W, dtype=jnp.int32) // W
    w = jnp.arange(H * W, dtype=jnp.int32) % W
    masks = []
    for dy in range(3):
        for dx in range(3):
            ok = (h + dy >= 1) & (h + dy <= H) & (w + dx >= 1) & (w + dx <= W)
            masks.append(ok.astype(jnp.float32))
    return jnp.stack(masks, axis=0).reshape(9, 1, H * W)


def conv_block_forward(x_nchw, params, out_channels):
    """x: (N, Cin, H, W) -> (N, Cout, H, W); inference-mode ConvBlock."""
    N, Cin, H, W = x_nchw.shape
    M = H * W                                   # 256: two full lane tiles
    cin_p = params["w1"].shape[1] // 9
    cout_p = params["w1"].shape[0]

    x = x_nchw.astype(jnp.float32)
    if cin_p != Cin:                            # pad channels to a sublane multiple
        x = jnp.pad(x, ((0, 0), (0, cin_p - Cin), (0, 0), (0, 0)))
    x = x.reshape(N, cin_p, M)                  # planar: pixels on the lane dim

    masks = make_tap_masks(H, W)

    kernel = functools.partial(conv_block_kernel, width=W)

    y = pl.pallas_call(
        kernel,
        out_shape=jax.ShapeDtypeStruct((N, cout_p, M), jnp.float32),
        grid=(N,),                              # >=2 parallel steps (v7x: 2 TCs)
        in_specs=[
            pl.BlockSpec((1, cin_p, M), lambda n: (n, 0, 0)),
            # weights / biases / masks: constant index_map -> DMA'd once, VMEM-resident
            pl.BlockSpec((cout_p, 9 * cin_p), lambda n: (0, 0)),
            pl.BlockSpec((cout_p, 1), lambda n: (0, 0)),
            pl.BlockSpec((cout_p, 9 * cout_p), lambda n: (0, 0)),
            pl.BlockSpec((cout_p, 1), lambda n: (0, 0)),
            pl.BlockSpec((9, 1, M), lambda n: (0, 0, 0)),
        ],
        out_specs=pl.BlockSpec((1, cout_p, M), lambda n: (n, 0, 0)),
        compiler_params=pltpu.CompilerParams(
            dimension_semantics=("parallel",)),
    )(x, params["w1"], params["b1"], params["w2"], params["b2"], masks)

    return y[:, :out_channels, :].reshape(N, out_channels, H, W)


# --------------------------- parameter construction ------------------------ #

def make_params(key, in_channels, out_channels):
    """Synthetic ConvBlock parameters (PyTorch-style init), pre-folded for the kernel."""
    cin_p = _round_up(in_channels, 8)
    cout_p = _round_up(out_channels, 8)
    k1, k2, k3, k4 = jax.random.split(key, 4)

    def conv_init(kw, kb, cin, cout):
        bound = 1.0 / (cin * 9.0) ** 0.5
        w = jax.random.uniform(kw, (cout, cin, 3, 3), jnp.float32, -bound, bound)
        b = jax.random.uniform(kb, (cout,), jnp.float32, -bound, bound)
        return w, b

    w1_oihw, b1_conv = conv_init(k1, k2, in_channels, out_channels)
    w2_oihw, b2_conv = conv_init(k3, k4, out_channels, out_channels)

    # BatchNorm2d defaults (inference): gamma=1, beta=0, running_mean=0, running_var=1.
    gamma = jnp.ones((out_channels,), jnp.float32)
    beta = jnp.zeros((out_channels,), jnp.float32)
    mean = jnp.zeros((out_channels,), jnp.float32)
    var = jnp.ones((out_channels,), jnp.float32)
    scale = gamma / jnp.sqrt(var + BN_EPS)

    def fold(w_oihw, conv_bias, cin, cin_pad):
        cout = w_oihw.shape[0]
        w = jnp.transpose(w_oihw, (0, 2, 3, 1))                      # (Cout, 3, 3, Cin)
        w = jnp.pad(w, ((0, cout_p - cout), (0, 0), (0, 0), (0, cin_pad - cin)))
        w = w.reshape(cout_p, 9 * cin_pad)                           # col = k*Cin_p + ci
        w = w * jnp.pad(scale, (0, cout_p - cout))[:, None]          # fold BN scale into W
        b = beta + scale * (conv_bias - mean)                        # folded BN bias
        b = jnp.pad(b, (0, cout_p - cout)).reshape(cout_p, 1)
        return w.astype(jnp.bfloat16), b.astype(jnp.float32)

    w1, b1 = fold(w1_oihw, b1_conv, in_channels, cin_p)
    w2, b2 = fold(w2_oihw, b2_conv, out_channels, cout_p)

    params = {"w1": w1, "b1": b1, "w2": w2, "b2": b2}
    raw = {"w1_oihw": w1_oihw, "b1_conv": b1_conv,
           "w2_oihw": w2_oihw, "b2_conv": b2_conv,
           "scale": scale, "beta": beta, "mean": mean}
    return params, raw


# ------------------------------ pure-JAX reference ------------------------- #

def conv_block_reference(x_nchw, raw):
    """Eval-mode ConvBlock in plain f32 JAX (unfolded conv-bias + BN + LeakyReLU)."""
    def layer(x, w_oihw, conv_bias):
        z = lax.conv_general_dilated(
            x, w_oihw, window_strides=(1, 1), padding="SAME",
            dimension_numbers=("NCHW", "OIHW", "NCHW"))
        z = z + conv_bias.reshape(1, -1, 1, 1)
        z = (z - raw["mean"].reshape(1, -1, 1, 1)) * raw["scale"].reshape(1, -1, 1, 1) \
            + raw["beta"].reshape(1, -1, 1, 1)
        return jnp.where(z >= 0, z, NEG_SLOPE * z)

    y = layer(x_nchw.astype(jnp.float32), raw["w1_oihw"], raw["b1_conv"])
    y = layer(y, raw["w2_oihw"], raw["b2_conv"])
    return y


# ---------------------------------- main ----------------------------------- #

if __name__ == "__main__":
    key = jax.random.PRNGKey(0)
    kx, kp = jax.random.split(key)

    N, Cin, H, W = 2, 4, 16, 16
    Cout = 8
    dropout_p = 0.1  # identity in inference mode

    x = jax.random.normal(kx, (N, Cin, H, W), dtype=jnp.float32)
    params, raw = make_params(kp, Cin, Cout)

    out = jax.block_until_ready(conv_block_forward(x, params, Cout))
    assert out.shape == (N, Cout, H, W), out.shape

    ref = jax.block_until_ready(conv_block_reference(x, raw))
    # Kernel uses bf16 MXU operands (f32 accumulate/epilogue); compare against the
    # f32 reference with a correspondingly relaxed tolerance.
    max_err = float(jnp.max(jnp.abs(out - ref)))
    assert jnp.allclose(out, ref, atol=2e-2, rtol=2e-2), max_err

    print("KERNEL_OK")
</pallas_src>

<mosaic_0001>
module attributes {stable_mosaic.version = 11 : i64} {
  func.func @conv_block_kernel(%arg0: i32, %arg1: memref<1x8x256xf32, #tpu.memory_space<vmem>>, %arg2: memref<8x72xbf16, #tpu.memory_space<vmem>>, %arg3: memref<8x1xf32, #tpu.memory_space<vmem>>, %arg4: memref<8x72xbf16, #tpu.memory_space<vmem>>, %arg5: memref<8x1xf32, #tpu.memory_space<vmem>>, %arg6: memref<9x1x256xf32, #tpu.memory_space<vmem>>, %arg7: memref<1x8x256xf32, #tpu.memory_space<vmem>>) attributes {dimension_semantics = [#tpu.dimension_semantics<parallel>], iteration_bounds = array<i64: 2>, scalar_prefetch = 0 : i64, scratch_operands = 0 : i64, tpu.core_type = #tpu.core_type<tc>, window_params = [{transform_indices = @transform_0, window_bounds = array<i64: 1, 8, 256>}, {pipeline_mode = #tpu.pipeline_mode<synchronous>, transform_indices = @transform_1, window_bounds = array<i64: 8, 72>}, {pipeline_mode = #tpu.pipeline_mode<synchronous>, transform_indices = @transform_2, window_bounds = array<i64: 8, 1>}, {pipeline_mode = #tpu.pipeline_mode<synchronous>, transform_indices = @transform_3, window_bounds = array<i64: 8, 72>}, {pipeline_mode = #tpu.pipeline_mode<synchronous>, transform_indices = @transform_4, window_bounds = array<i64: 8, 1>}, {pipeline_mode = #tpu.pipeline_mode<synchronous>, transform_indices = @transform_5, window_bounds = array<i64: 9, 1, 256>}, {transform_indices = @transform_6, window_bounds = array<i64: 1, 8, 256>}]} {
    %c0 = arith.constant 0 : index
    %c0_0 = arith.constant 0 : index
    %c0_1 = arith.constant 0 : index
    %0 = vector.load %arg1[%c0, %c0_0, %c0_1] : memref<1x8x256xf32, #tpu.memory_space<vmem>>, vector<1x8x256xf32>
    %1 = vector.shape_cast %0 : vector<1x8x256xf32> to vector<8x256xf32>
    %cst = arith.constant 0.000000e+00 : f32
    %2 = vector.broadcast %cst : f32 to vector<8x128xf32>
    %3 = tpu.concatenate %2, %1, %2 in 1 : vector<8x128xf32>, vector<8x256xf32>, vector<8x128xf32> -> vector<8x512xf32>
    %4 = vector.extract_strided_slice %3 {offsets = [0, 111], sizes = [8, 256], strides = [1, 1]} : vector<8x512xf32> to vector<8x256xf32>
    %c0_2 = arith.constant 0 : index
    %c0_3 = arith.constant 0 : index
    %c0_4 = arith.constant 0 : index
    %5 = vector.load %arg6[%c0_2, %c0_3, %c0_4] : memref<9x1x256xf32, #tpu.memory_space<vmem>>, vector<1x1x256xf32>
    %6 = vector.shape_cast %5 : vector<1x1x256xf32> to vector<1x256xf32>
    %7 = vector.broadcast %6 : vector<1x256xf32> to vector<8x256xf32>
    %8 = arith.mulf %4, %7 : vector<8x256xf32>
    %9 = vector.extract_strided_slice %3 {offsets = [0, 112], sizes = [8, 256], strides = [1, 1]} : vector<8x512xf32> to vector<8x256xf32>
    %c1 = arith.constant 1 : index
    %c0_5 = arith.constant 0 : index
    %c0_6 = arith.constant 0 : index
    %10 = vector.load %arg6[%c1, %c0_5, %c0_6] : memref<9x1x256xf32, #tpu.memory_space<vmem>>, vector<1x1x256xf32>
    %11 = vector.shape_cast %10 : vector<1x1x256xf32> to vector<1x256xf32>
    %12 = vector.broadcast %11 : vector<1x256xf32> to vector<8x256xf32>
    %13 = arith.mulf %9, %12 : vector<8x256xf32>
    %14 = vector.extract_strided_slice %3 {offsets = [0, 113], sizes = [8, 256], strides = [1, 1]} : vector<8x512xf32> to vector<8x256xf32>
    %c2 = arith.constant 2 : index
    %c0_7 = arith.constant 0 : index
    %c0_8 = arith.constant 0 : index
    %15 = vector.load %arg6[%c2, %c0_7, %c0_8] : memref<9x1x256xf32, #tpu.memory_space<vmem>>, vector<1x1x256xf32>
    %16 = vector.shape_cast %15 : vector<1x1x256xf32> to vector<1x256xf32>
    %17 = vector.broadcast %16 : vector<1x256xf32> to vector<8x256xf32>
    %18 = arith.mulf %14, %17 : vector<8x256xf32>
    %19 = vector.extract_strided_slice %3 {offsets = [0, 127], sizes = [8, 256], strides = [1, 1]} : vector<8x512xf32> to vector<8x256xf32>
    %c3 = arith.constant 3 : index
    %c0_9 = arith.constant 0 : index
    %c0_10 = arith.constant 0 : index
    %20 = vector.load %arg6[%c3, %c0_9, %c0_10] : memref<9x1x256xf32, #tpu.memory_space<vmem>>, vector<1x1x256xf32>
    %21 = vector.shape_cast %20 : vector<1x1x256xf32> to vector<1x256xf32>
    %22 = vector.broadcast %21 : vector<1x256xf32> to vector<8x256xf32>
    %23 = arith.mulf %19, %22 : vector<8x256xf32>
    %24 = vector.extract_strided_slice %3 {offsets = [0, 129], sizes = [8, 256], strides = [1, 1]} : vector<8x512xf32> to vector<8x256xf32>
    %c5 = arith.constant 5 : index
    %c0_11 = arith.constant 0 : index
    %c0_12 = arith.constant 0 : index
    %25 = vector.load %arg6[%c5, %c0_11, %c0_12] : memref<9x1x256xf32, #tpu.memory_space<vmem>>, vector<1x1x256xf32>
    %26 = vector.shape_cast %25 : vector<1x1x256xf32> to vector<1x256xf32>
    %27 = vector.broadcast %26 : vector<1x256xf32> to vector<8x256xf32>
    %28 = arith.mulf %24, %27 : vector<8x256xf32>
    %29 = vector.extract_strided_slice %3 {offsets = [0, 143], sizes = [8, 256], strides = [1, 1]} : vector<8x512xf32> to vector<8x256xf32>
    %c6 = arith.constant 6 : index
    %c0_13 = arith.constant 0 : index
    %c0_14 = arith.constant 0 : index
    %30 = vector.load %arg6[%c6, %c0_13, %c0_14] : memref<9x1x256xf32, #tpu.memory_space<vmem>>, vector<1x1x256xf32>
    %31 = vector.shape_cast %30 : vector<1x1x256xf32> to vector<1x256xf32>
    %32 = vector.broadcast %31 : vector<1x256xf32> to vector<8x256xf32>
    %33 = arith.mulf %29, %32 : vector<8x256xf32>
    %34 = vector.extract_strided_slice %3 {offsets = [0, 144], sizes = [8, 256], strides = [1, 1]} : vector<8x512xf32> to vector<8x256xf32>
    %c7 = arith.constant 7 : index
    %c0_15 = arith.constant 0 : index
    %c0_16 = arith.constant 0 : index
    %35 = vector.load %arg6[%c7, %c0_15, %c0_16] : memref<9x1x256xf32, #tpu.memory_space<vmem>>, vector<1x1x256xf32>
    %36 = vector.shape_cast %35 : vector<1x1x256xf32> to vector<1x256xf32>
    %37 = vector.broadcast %36 : vector<1x256xf32> to vector<8x256xf32>
    %38 = arith.mulf %34, %37 : vector<8x256xf32>
    %39 = vector.extract_strided_slice %3 {offsets = [0, 145], sizes = [8, 256], strides = [1, 1]} : vector<8x512xf32> to vector<8x256xf32>
    %c8 = arith.constant 8 : index
    %c0_17 = arith.constant 0 : index
    %c0_18 = arith.constant 0 : index
    %40 = vector.load %arg6[%c8, %c0_17, %c0_18] : memref<9x1x256xf32, #tpu.memory_space<vmem>>, vector<1x1x256xf32>
    %41 = vector.shape_cast %40 : vector<1x1x256xf32> to vector<1x256xf32>
    %42 = vector.broadcast %41 : vector<1x256xf32> to vector<8x256xf32>
    %43 = arith.mulf %39, %42 : vector<8x256xf32>
    %44 = tpu.concatenate %8, %13, %18, %23, %1, %28, %33, %38, %43 in 0 : vector<8x256xf32>, vector<8x256xf32>, vector<8x256xf32>, vector<8x256xf32>, vector<8x256xf32>, vector<8x256xf32>, vector<8x256xf32>, vector<8x256xf32>, vector<8x256xf32> -> vector<72x256xf32>
    %c0_19 = arith.constant 0 : index
    %c0_20 = arith.constant 0 : index
    %45 = vector.load %arg2[%c0_19, %c0_20] : memref<8x72xbf16, #tpu.memory_space<vmem>>, vector<8x72xbf16>
    %46 = arith.truncf %44 : vector<72x256xf32> to vector<72x256xbf16>
    %cst_21 = arith.constant dense<0.000000e+00> : vector<8x256xf32>
    %47 = tpu.matmul %45, %46, %cst_21 {dimension_numbers = #tpu.dot_dimension_numbers<[1], [0], [0], [1], [0, 0, 1, 1], [], []>} : vector<8x72xbf16>, vector<72x256xbf16>, vector<8x256xf32> -> vector<8x256xf32>
    %c0_22 = arith.constant 0 : index
    %c0_23 = arith.constant 0 : index
    %48 = vector.load %arg3[%c0_22, %c0_23] : memref<8x1xf32, #tpu.memory_space<vmem>>, vector<8x1xf32>
    %49 = vector.broadcast %48 : vector<8x1xf32> to vector<8x256xf32>
    %50 = arith.addf %47, %49 : vector<8x256xf32>
    %cst_24 = arith.constant 0.000000e+00 : f32
    %51 = vector.broadcast %cst_24 : f32 to vector<8x256xf32>
    %52 = arith.cmpf oge, %50, %51 : vector<8x256xf32>
    %cst_25 = arith.constant 0.00999999977 : f32
    %53 = vector.broadcast %cst_25 : f32 to vector<8x256xf32>
    %54 = arith.mulf %53, %50 : vector<8x256xf32>
    %55 = arith.select %52, %50, %54 : vector<8x256xi1>, vector<8x256xf32>
    %cst_26 = arith.constant 0.000000e+00 : f32
    %56 = vector.broadcast %cst_26 : f32 to vector<8x128xf32>
    %57 = tpu.concatenate %56, %55, %56 in 1 : vector<8x128xf32>, vector<8x256xf32>, vector<8x128xf32> -> vector<8x512xf32>
    %58 = vector.extract_strided_slice %57 {offsets = [0, 111], sizes = [8, 256], strides = [1, 1]} : vector<8x512xf32> to vector<8x256xf32>
    %c0_27 = arith.constant 0 : index
    %c0_28 = arith.constant 0 : index
    %c0_29 = arith.constant 0 : index
    %59 = vector.load %arg6[%c0_27, %c0_28, %c0_29] : memref<9x1x256xf32, #tpu.memory_space<vmem>>, vector<1x1x256xf32>
    %60 = vector.shape_cast %59 : vector<1x1x256xf32> to vector<1x256xf32>
    %61 = vector.broadcast %60 : vector<1x256xf32> to vector<8x256xf32>
    %62 = arith.mulf %58, %61 : vector<8x256xf32>
    %63 = vector.extract_strided_slice %57 {offsets = [0, 112], sizes = [8, 256], strides = [1, 1]} : vector<8x512xf32> to vector<8x256xf32>
    %c1_30 = arith.constant 1 : index
    %c0_31 = arith.constant 0 : index
    %c0_32 = arith.constant 0 : index
    %64 = vector.load %arg6[%c1_30, %c0_31, %c0_32] : memref<9x1x256xf32, #tpu.memory_space<vmem>>, vector<1x1x256xf32>
    %65 = vector.shape_cast %64 : vector<1x1x256xf32> to vector<1x256xf32>
    %66 = vector.broadcast %65 : vector<1x256xf32> to vector<8x256xf32>
    %67 = arith.mulf %63, %66 : vector<8x256xf32>
    %68 = vector.extract_strided_slice %57 {offsets = [0, 113], sizes = [8, 256], strides = [1, 1]} : vector<8x512xf32> to vector<8x256xf32>
    %c2_33 = arith.constant 2 : index
    %c0_34 = arith.constant 0 : index
    %c0_35 = arith.constant 0 : index
    %69 = vector.load %arg6[%c2_33, %c0_34, %c0_35] : memref<9x1x256xf32, #tpu.memory_space<vmem>>, vector<1x1x256xf32>
    %70 = vector.shape_cast %69 : vector<1x1x256xf32> to vector<1x256xf32>
    %71 = vector.broadcast %70 : vector<1x256xf32> to vector<8x256xf32>
    %72 = arith.mulf %68, %71 : vector<8x256xf32>
    %73 = vector.extract_strided_slice %57 {offsets = [0, 127], sizes = [8, 256], strides = [1, 1]} : vector<8x512xf32> to vector<8x256xf32>
    %c3_36 = arith.constant 3 : index
    %c0_37 = arith.constant 0 : index
    %c0_38 = arith.constant 0 : index
    %74 = vector.load %arg6[%c3_36, %c0_37, %c0_38] : memref<9x1x256xf32, #tpu.memory_space<vmem>>, vector<1x1x256xf32>
    %75 = vector.shape_cast %74 : vector<1x1x256xf32> to vector<1x256xf32>
    %76 = vector.broadcast %75 : vector<1x256xf32> to vector<8x256xf32>
    %77 = arith.mulf %73, %76 : vector<8x256xf32>
    %78 = vector.extract_strided_slice %57 {offsets = [0, 129], sizes = [8, 256], strides = [1, 1]} : vector<8x512xf32> to vector<8x256xf32>
    %c5_39 = arith.constant 5 : index
    %c0_40 = arith.constant 0 : index
    %c0_41 = arith.constant 0 : index
    %79 = vector.load %arg6[%c5_39, %c0_40, %c0_41] : memref<9x1x256xf32, #tpu.memory_space<vmem>>, vector<1x1x256xf32>
    %80 = vector.shape_cast %79 : vector<1x1x256xf32> to vector<1x256xf32>
    %81 = vector.broadcast %80 : vector<1x256xf32> to vector<8x256xf32>
    %82 = arith.mulf %78, %81 : vector<8x256xf32>
    %83 = vector.extract_strided_slice %57 {offsets = [0, 143], sizes = [8, 256], strides = [1, 1]} : vector<8x512xf32> to vector<8x256xf32>
    %c6_42 = arith.constant 6 : index
    %c0_43 = arith.constant 0 : index
    %c0_44 = arith.constant 0 : index
    %84 = vector.load %arg6[%c6_42, %c0_43, %c0_44] : memref<9x1x256xf32, #tpu.memory_space<vmem>>, vector<1x1x256xf32>
    %85 = vector.shape_cast %84 : vector<1x1x256xf32> to vector<1x256xf32>
    %86 = vector.broadcast %85 : vector<1x256xf32> to vector<8x256xf32>
    %87 = arith.mulf %83, %86 : vector<8x256xf32>
    %88 = vector.extract_strided_slice %57 {offsets = [0, 144], sizes = [8, 256], strides = [1, 1]} : vector<8x512xf32> to vector<8x256xf32>
    %c7_45 = arith.constant 7 : index
    %c0_46 = arith.constant 0 : index
    %c0_47 = arith.constant 0 : index
    %89 = vector.load %arg6[%c7_45, %c0_46, %c0_47] : memref<9x1x256xf32, #tpu.memory_space<vmem>>, vector<1x1x256xf32>
    %90 = vector.shape_cast %89 : vector<1x1x256xf32> to vector<1x256xf32>
    %91 = vector.broadcast %90 : vector<1x256xf32> to vector<8x256xf32>
    %92 = arith.mulf %88, %91 : vector<8x256xf32>
    %93 = vector.extract_strided_slice %57 {offsets = [0, 145], sizes = [8, 256], strides = [1, 1]} : vector<8x512xf32> to vector<8x256xf32>
    %c8_48 = arith.constant 8 : index
    %c0_49 = arith.constant 0 : index
    %c0_50 = arith.constant 0 : index
    %94 = vector.load %arg6[%c8_48, %c0_49, %c0_50] : memref<9x1x256xf32, #tpu.memory_space<vmem>>, vector<1x1x256xf32>
    %95 = vector.shape_cast %94 : vector<1x1x256xf32> to vector<1x256xf32>
    %96 = vector.broadcast %95 : vector<1x256xf32> to vector<8x256xf32>
    %97 = arith.mulf %93, %96 : vector<8x256xf32>
    %98 = tpu.concatenate %62, %67, %72, %77, %55, %82, %87, %92, %97 in 0 : vector<8x256xf32>, vector<8x256xf32>, vector<8x256xf32>, vector<8x256xf32>, vector<8x256xf32>, vector<8x256xf32>, vector<8x256xf32>, vector<8x256xf32>, vector<8x256xf32> -> vector<72x256xf32>
    %c0_51 = arith.constant 0 : index
    %c0_52 = arith.constant 0 : index
    %99 = vector.load %arg4[%c0_51, %c0_52] : memref<8x72xbf16, #tpu.memory_space<vmem>>, vector<8x72xbf16>
    %100 = arith.truncf %98 : vector<72x256xf32> to vector<72x256xbf16>
    %cst_53 = arith.constant dense<0.000000e+00> : vector<8x256xf32>
    %101 = tpu.matmul %99, %100, %cst_53 {dimension_numbers = #tpu.dot_dimension_numbers<[1], [0], [0], [1], [0, 0, 1, 1], [], []>} : vector<8x72xbf16>, vector<72x256xbf16>, vector<8x256xf32> -> vector<8x256xf32>
    %c0_54 = arith.constant 0 : index
    %c0_55 = arith.constant 0 : index
    %102 = vector.load %arg5[%c0_54, %c0_55] : memref<8x1xf32, #tpu.memory_space<vmem>>, vector<8x1xf32>
    %103 = vector.broadcast %102 : vector<8x1xf32> to vector<8x256xf32>
    %104 = arith.addf %101, %103 : vector<8x256xf32>
    %cst_56 = arith.constant 0.000000e+00 : f32
    %105 = vector.broadcast %cst_56 : f32 to vector<8x256xf32>
    %106 = arith.cmpf oge, %104, %105 : vector<8x256xf32>
    %cst_57 = arith.constant 0.00999999977 : f32
    %107 = vector.broadcast %cst_57 : f32 to vector<8x256xf32>
    %108 = arith.mulf %107, %104 : vector<8x256xf32>
    %109 = arith.select %106, %104, %108 : vector<8x256xi1>, vector<8x256xf32>
    %c0_58 = arith.constant 0 : index
    %c0_59 = arith.constant 0 : index
    %c0_60 = arith.constant 0 : index
    %110 = vector.load %arg7[%c0_58, %c0_59, %c0_60] : memref<1x8x256xf32, #tpu.memory_space<vmem>>, vector<1x8x256xf32>
    %111 = vector.shape_cast %110 : vector<1x8x256xf32> to vector<8x256xf32>
    %112 = vector.shape_cast %109 : vector<8x256xf32> to vector<1x8x256xf32>
    tpu.vector_store %arg7[%c0_58, %c0_59, %c0_60], %112 {strides = array<i32>} : memref<1x8x256xf32, #tpu.memory_space<vmem>>, vector<1x8x256xf32>,
    return
  }
  func.func @transform_0(%arg0: i32) -> (i32, i32, i32) {
    %c0_i32 = arith.constant 0 : i32
    %c0_i32_0 = arith.constant 0 : i32
    %c0_i32_1 = arith.constant 0 : i32
    return %arg0, %c0_i32, %c0_i32_0 : i32, i32, i32
  }
  func.func @transform_1(%arg0: i32) -> (i32, i32) {
    %c0_i32 = arith.constant 0 : i32
    %c0_i32_0 = arith.constant 0 : i32
    %c0_i32_1 = arith.constant 0 : i32
    return %c0_i32, %c0_i32_0 : i32, i32
  }
  func.func @transform_2(%arg0: i32) -> (i32, i32) {
    %c0_i32 = arith.constant 0 : i32
    %c0_i32_0 = arith.constant 0 : i32
    %c0_i32_1 = arith.constant 0 : i32
    return %c0_i32, %c0_i32_0 : i32, i32
  }
  func.func @transform_3(%arg0: i32) -> (i32, i32) {
    %c0_i32 = arith.constant 0 : i32
    %c0_i32_0 = arith.constant 0 : i32
    %c0_i32_1 = arith.constant 0 : i32
    return %c0_i32, %c0_i32_0 : i32, i32
  }
  func.func @transform_4(%arg0: i32) -> (i32, i32) {
    %c0_i32 = arith.constant 0 : i32
    %c0_i32_0 = arith.constant 0 : i32
    %c0_i32_1 = arith.constant 0 : i32
    return %c0_i32, %c0_i32_0 : i32, i32
  }
  func.func @transform_5(%arg0: i32) -> (i32, i32, i32) {
    %c0_i32 = arith.constant 0 : i32
    %c0_i32_0 = arith.constant 0 : i32
    %c0_i32_1 = arith.constant 0 : i32
    %c0_i32_2 = arith.constant 0 : i32
    return %c0_i32, %c0_i32_0, %c0_i32_1 : i32, i32, i32
  }
  func.func @transform_6(%arg0: i32) -> (i32, i32, i32) {
    %c0_i32 = arith.constant 0 : i32
    %c0_i32_0 = arith.constant 0 : i32
    %c0_i32_1 = arith.constant 0 : i32
    return %arg0, %c0_i32, %c0_i32_0 : i32, i32, i32
  }
}

</mosaic_0001>

<bundles_post_ra>
// kernel: tpu_custom_call.1
= control target key start
LH: loop header
LB: loop body
LE: loop exit
PB: predicated region body
PF: predicated region fallthrough
CT: control target
= control target key end

     0   :  { %11 = vsyncpa [#allocation3], 0  ;;  %s1840_s0 = inlined_call_operand.hbm [shape: f32[2,8,256], index: 0, kind: input, shape index: {}]   ;;  %s1841_s1 = inlined_call_operand.vmem [shape: bf16[8,72], index: 1, kind: input, shape index: {}]   ;;  %s1842_s2 = inlined_call_operand.vmem [shape: f32[8,1], index: 2, kind: input, shape index: {}]   ;;  %s1843_s3 = inlined_call_operand.vmem [shape: bf16[8,72], index: 3, kind: input, shape index: {}]   ;;  %s1844_s4 = inlined_call_operand.vmem [shape: f32[8,1], index: 4, kind: input, shape index: {}]   ;;  %s1845_s5 = inlined_call_operand.vmem [shape: f32[9,1,256], index: 5, kind: input, shape index: {}]   ;;  %s1846_s6 = inlined_call_operand.hbm [shape: f32[2,8,256], index: 6, kind: output, shape index: {}]  }
   0x1   :  { %13 = vsyncpa [#allocation3 + $0x1], 0 }
   0x2   :  { %14 = vsyncpa [#allocation4], 0 }
   0x3   :  { %16 = vsyncpa [#allocation4 + $0x1], 0  ;;  %s1356_s21 = smov 0   ;;  %s1358_s22 = smov 0  }
   0x4   :  { %s1360_s23 = smov 0   ;;  %s1362_s24 = smov 0  }
   0x5 LB: > { %s1377_s25 = sadd.s32 4294967295, %s1303_s24   ;;  %s1042_s26 = sadd.s32 4294967294, %s1303_s24   ;;  %s1303_s24 = sphi %s1362_s24, %s1863_s24   ;;  %s1299_s23 = sphi %s1360_s23, %s1862_s23   ;;  %s1295_s22 = sphi %s1358_s22, %s1861_s22   ;;  %s1291_s21 = sphi %s1356_s21, %s1860_s21  }
   0x6   : > { %s1381_s27 = sadd.s32 1, %s1303_s24   ;;  %s29_s28 = sadd.s32 1, %s1299_s23 }
   0x7   : > { %s26_s29 = ssub.s32 %s1303_s24, %s1381_s27  ;;  %p36_p0 = scmp.ne.s32.totalorder %s1299_s23, %s1295_s22 }
   0x8   : > { %p27_p1 = scmp.eq.s32.totalorder %s26_s29, 0  ;;  %p37_p2 = scmp.eq.s32.totalorder %s1303_s24, 0 }
   0x9   : > { %p42_p3 = scmp.ne.s32.totalorder %s1295_s22, %s1291_s21  ;;  %p43_p4 = scmp.eq.s32.totalorder %s1377_s25, 0 }
   0xa   : > { %s1393_s30 = scalar_select %p27_p1, %s1299_s23, %s29_s28  }
   0xb   : > { %p1395_p5 = por %p37_p2, %p36_p0  ;;  %p1399_p6 = por %p43_p4, %p42_p3 }
   0xc   : > { %p171_p7 = scmp.eq.s32.totalorder %s1377_s25, 1  ;;  %p177_p8 = scmp.eq.s32.totalorder %s1042_s26, 1 }
   0xd   : > { %s1850_s8 = scalar_select %p1399_p6, 1, 0 }
   0xe   : > { %p1081_p10 = scmp.lt.s32.totalorder %s1303_s24, 2  ;;  %p1406_p11 = por %p171_p7, %p36_p0 }
   0xf   : > { %p1410_p12 = por %p177_p8, %p42_p3  ;;  %s212_s11 = sand.u32 1, %s1299_s23  }
  0x10   : > { %s1851_s9 = scalar_select %p1406_p11, 1, 0 }
  0x11   : > { %s1852_s10 = scalar_select %p1410_p12, 1, 0 }
  0x12   : > { %s1067_s12 = sshll.u32 %s1303_s24, 8  ;;  %s1045_s13 = sshll.u32 %s212_s11, 4 }
  0x13   : > { %s1419_s16 = scalar_lea.hbm %s1840_s0, %s1067_s12  ;;  %s216_s17 = scalar_lea.vmem [#allocation2], %s1045_s13 }
  0x14   : > { %s224_s18 = sshll.u32 %s216_s17, 4  ;;  %p1423_p13 = pnand %p1081_p10, %p1395_p5  ;;  %s1427_s18 = int_to_ptr.vmem [resolvable:$true] %s224_s18 }
  0x15   : > { %s213_s20 = scalar_lea.sflag [#allocation3], %s212_s11  ;;  %s1211_s26 = scalar_lea.hbm %s1419_s16, 256 }
  0x16   : > { %p1212_p2 = scmp.ne.s32.totalorder %s1419_s16, %s1211_s26  ;;  %p1213_p3 = pneg %p1423_p13 }
  0x17   : > { %s1216_s7 = scalar_lea.hbm %s1840_s0, 512  ;;  %p1217_p5 = scmp.lt.s32.totalorder %s1419_s16, %s1840_s0 }
  0x18   : > { %p1214_p4 = pnand %p1213_p3, %p1212_p2  ;;  %p1218_p8 = scmp.lt.s32.totalorder %s1216_s7, %s1211_s26 }
  0x1a   : > { %p1215_p7 = pneg %p1214_p4  ;;  %p1219_p10 = por %p1218_p8, %p1217_p5 }
  0x1c   : > { %p1220_p9 = pnand %p1219_p10, %p1215_p7 }
  0x1e   : > { %1223 = shalt.err (!%p1220_p9)
}
  0x1f   : > { %s1224_s11 = scalar_lea.vmem %s1427_s18, 256  ;;  %s1305_s14 = smov [#allocation2]  }
  0x20   : > { %p1225_p0 = scmp.ne.s32.totalorder %s1427_s18, %s1224_s11  ;;  %s1229_s15 = sshll.u32 %s1305_s14, 4  ;;  %s1230_s15 = int_to_ptr.vmem [resolvable:$false] %s1229_s15 }
  0x21   : > { %s1231_s17 = scalar_lea.vmem %s1230_s15, 512  ;;  %p1232_p4 = scmp.lt.s32.totalorder %s1427_s18, %s1230_s15 }
  0x22   : > { %p1227_p1 = pnand %p1225_p0, %p1213_p3  ;;  %p1233_p12 = scmp.lt.s32.totalorder %s1231_s17, %s1224_s11 }
  0x24   : > { %p1228_p2 = pneg %p1227_p1  ;;  %p1234_p11 = por %p1233_p12, %p1232_p4 }
  0x26   : > { %p1235_p6 = pnand %p1234_p11, %p1228_p2 }
  0x28   : > { %1238 = shalt.err (!%p1235_p6)
}
  0x29   : > { %1076 = dma.hbm_to_vmem [thread:$0]  (!%p1423_p13), %s1419_s16, 256, %s1427_s18, %s213_s20  }
  0x2a   : > { %p1854_p9 = scmp.lt.s32.totalorder %s1303_s24, 3  ;;  %p1855_p7 = scmp.ge.s32.totalorder %s1303_s24, 1 }
  0x2c   : > { %p230_p0 = pnand %p1855_p7, %p1854_p9 }
  0x2d   : > { %s1454_s26 = sand.u32 (!%p230_p0), 1, %s1295_s22   ;;  %p1856_p6 = scmp.ne.s32.totalorder (!%p230_p0), %s1850_s8, 0 }
  0x2e   : > { %233 = sbr.rel (%p230_p0) target bundleno = 1151 (0x47f), region = 44  ;;  %s1049_s28 = sshll.u32 (!%p230_p0), %s1454_s26, 4 }
  0x2f   : > { %s236_s29 = scalar_lea.sflag (!%p230_p0), [#allocation3], %s1454_s26  ;;  %s1460_s19 = scalar_lea.vmem (!%p230_p0), [#allocation2], %s1049_s28 }
  0x33   : > { %1282 = dma.done.wait (%p1856_p6), %s236_s29, 256  }
  0x34   : > { %1284 = vsyncadd (%p1856_p6), %s236_s29, 4294967040  ;;  %v273_v0 = vlaneseq  ;;  %v1057_v4 = vld [vmem:[%s1845_s5 + $0x10] sm:$0x3]  ;;  %v1055_v5 = vld [vmem:[%s1845_s5 + $0xc] sm:$0x3]  ;;  %s1306_s8 = smov 17  }
  0x35   : > { %s1307_s12 = smov 15   ;;  %v1056_v10 = vld [vmem:[%s1845_s5 + $0xe] sm:$0x3]  ;;  %v1054_v13 = vld [vmem:[%s1845_s5 + $0xa] sm:$0x3]  ;;  %s1308_s17 = smov 16  }
  0x36   : > { %v274_v1 = vshrl.u32 %v273_v0, 7  ;;  %v1052_v16 = vld [vmem:[%s1845_s5 + $0x4] sm:$0x3]  ;;  %s1309_s18 = smov 1   ;;  %v1053_v19 = vld [vmem:[%s1845_s5 + $0x6] sm:$0x3] }
  0x37   : > { %v1051_v22 = vld [vmem:[%s1845_s5 + $0x2] sm:$0x3]  ;;  %s1311_s14 = smov 127   ;;  %v1513_v26 = vld [vmem:[%s1460_s19 + $0x8] sm:$0xff]  ;;  %s1312_s15 = smov 112   ;;  %vm446_vm0 = vcmask 138240  }
  0x38   : > { %v1466_v2 = vsub.s32 0, %v274_v1  ;;  %v1468_v3 = vsub.s32 1, %v274_v1  ;;  %v1510_v25 = vld [vmem:[%s1460_s19] sm:$0xff]  ;;  %s1314_s19 = smov 94   ;;  %vm400_vm1 = vcmask 121856   ;;  %s1315_s29 = smov 96  }
  0x39   : > { %v1129_v27 = vpack.i.bf16 %v1513_v26, %v1510_v25  ;;  %vm423_vm2 = vcmask 130048   ;;  %vm377_vm3 = vcmask 7168   ;;  %s1316_s16 = smov 95   ;;  %v271_v46 = vld [vmem:[%s1845_s5] sm:$0x3]  ;;  %vm331_vm4 = vcmask 924672  }
  0x3a   : > { %v437_v6 = vrot.slane %v1057_v4, %v1466_v2  ;;  %v391_v7 = vrot.slane %v1055_v5, %v1466_v2  ;;  %v441_v8 = vrot.slane %v1057_v4, %v1468_v3  ;;  %v395_v9 = vrot.slane %v1055_v5, %v1468_v3  ;;  %s958_s11 = scalar_lea.sflag [#allocation4], %s1454_s26  ;;  %p1857_p12 = scmp.ne.s32.totalorder %s1851_s9, 0 }
  0x3b   : > { %v414_v11 = vrot.slane %v1056_v10, %v1466_v2  ;;  %v418_v12 = vrot.slane %v1056_v10, %v1468_v3  ;;  %v372_v14 = vrot.slane %v1054_v13, %v1468_v3  ;;  %v368_v15 = vrot.slane %v1054_v13, %v1466_v2 }
  0x3c   : > { %442 = vrot.lane.b32.xlu0 %v437_v6, %s1306_s8  ;;  %396 = vrot.lane.b32.xlu1 %v391_v7, %s1307_s12  ;;  %v322_v17 = vrot.slane %v1052_v16, %v1466_v2  ;;  %v326_v18 = vrot.slane %v1052_v16, %v1468_v3  ;;  %v345_v20 = vrot.slane %v1053_v19, %v1466_v2  ;;  %vm354_vm5 = vcmask 1039360  }
  0x3d   : > { %v349_v21 = vrot.slane %v1053_v19, %v1468_v3  ;;  %v303_v23 = vrot.slane %v1051_v22, %v1468_v3  ;;  %v299_v24 = vrot.slane %v1051_v22, %v1466_v2  ;;  %v276_v53 = vrot.slane %v271_v46, %v1466_v2 }
  0x3e   : > { %vm308_vm6 = vcmask 916480   ;;  %vm561_vm7 = vcmask 769024   ;;  %vm546_vm8 = vcmask 777216   ;;  %vm531_vm9 = vcmask 785408  }
  0x3f   : > { %vm516_vm10 = vcmask 900096   ;;  %vm285_vm11 = vcmask 908288   ;;  %vm477_vm12 = vcmask 1031168   ;;  %vm657_vm13 = vcmask 1043456  }
  0x40   : > { %444 = vrot.lane.b32.xlu0 %v441_v8, %s1306_s8  ;;  %398 = vrot.lane.b32.xlu1 %v395_v9, %s1307_s12  ;;  %s1310_s12 = smov 113   ;;  %vm653_vm14 = vcmask 588800  }
  0x44   : > { %419 = vrot.lane.b32.xlu0 %v414_v11, %s1308_s17  ;;  %421 = vrot.lane.b32.xlu1 %v418_v12, %s1308_s17  ;;  %s1313_s17 = smov 111  }
  0x48   : > { %375 = vrot.lane.b32.xlu1 %v372_v14, %s1309_s18  ;;  %373 = vrot.lane.b32.xlu0 %v368_v15, %s1309_s18  ;;  %s1317_s18 = smov 110   ;;  %v280_v15 = vrot.slane %v271_v46, %v1468_v3 }
  0x4c   : > { %327 = vrot.lane.b32.xlu0 %v322_v17, %s1310_s12  ;;  %329 = vrot.lane.b32.xlu1 %v326_v18, %s1310_s12  ;;  %s1318_s12 = smov 126  }
  0x50   : > { %350 = vrot.lane.b32.xlu0 %v345_v20, %s1311_s14  ;;  %352 = vrot.lane.b32.xlu1 %v349_v21, %s1311_s14 }
  0x54   : > { %306 = vrot.lane.b32.xlu1 %v303_v23, %s1312_s15  ;;  %304 = vrot.lane.b32.xlu0 %v299_v24, %s1312_s15 }
  0x58   : > { %1130 = vrot.lane.b32.xlu0 %v1129_v27, %s1313_s17 }
  0xae   : > { %v1520_v28 = vpop.permute.xlu0 %442  ;;  %v1522_v29 = vpop.permute.xlu1 %396 }
  0xaf   : > { %v451_v43 = vmul.f32 %v1520_v28, %v1510_v25  ;;  %v405_v52 = vmul.f32 %v1522_v29, %v1510_v25 }
  0xb2   : > { %v445_v30 = vpop.permute.xlu0 %444  ;;  %v399_v31 = vpop.permute.xlu1 %398 }
  0xb3   : > { %v453_v32 = vmul.f32 0.0, %v445_v30  ;;  %v407_v35 = vmul.f32 0.0, %v399_v31  ;;  %v1529_v36 = vsel %vm446_vm0, %v1520_v28, %v445_v30  ;;  %v1537_v42 = vsel %vm400_vm1, %v1522_v29, %v399_v31 }
  0xb4   : > { %v452_v39 = vmul.f32 %v1529_v36, %v1513_v26  ;;  %v406_v47 = vmul.f32 %v1537_v42, %v1513_v26 }
  0xb5   : > { %559 = vrot.lane.b32.xlu1 %v453_v32, %s1314_s19 }
  0xb6   : > { %v1525_v33 = vpop.permute.xlu0 %419  ;;  %v422_v34 = vpop.permute.xlu1 %421  ;;  %v1134_v50 = vpack.i.bf16 %v452_v39, %v451_v43  ;;  %v1139_v60 = vpack.i.bf16 %v406_v47, %v405_v52 }
  0xb7   : > { %v430_v40 = vmul.f32 0.0, %v422_v34  ;;  %v1551_v48 = vsel %vm423_vm2, %v1525_v33, %v422_v34  ;;  %v428_v54 = vmul.f32 %v1525_v33, %v1510_v25 }
  0xb8   : > { %v429_v55 = vmul.f32 %v1551_v48, %v1513_v26 }
  0xb9   : > { %529 = vrot.lane.b32.xlu1 %v407_v35, %s1315_s29 }
  0xba   : > { %v376_v37 = vpop.permute.xlu1 %375  ;;  %v1532_v38 = vpop.permute.xlu0 %373  ;;  %v1144_v62 = vpack.i.bf16 %v429_v55, %v428_v54 }
  0xbb   : > { %v384_v41 = vmul.f32 0.0, %v376_v37  ;;  %v1554_v51 = vsel %vm377_vm3, %v1532_v38, %v376_v37  ;;  %v382_v58 = vmul.f32 %v1532_v38, %v1510_v25 }
  0xbc   : > { %v383_v59 = vmul.f32 %v1554_v51, %v1513_v26 }
  0xbd   : > { %544 = vrot.lane.b32.xlu1 %v430_v40, %s1316_s16  ;;  %514 = vrot.lane.b32.xlu0 %v384_v41, %s1317_s18 }
  0xbe   : > { %v328_v44 = vpop.permute.xlu0 %327  ;;  %v1543_v45 = vpop.permute.xlu1 %329  ;;  %v1149_v5 = vpack.i.bf16 %v383_v59, %v382_v58 }
  0xbf   : > { %v336_v49 = vmul.f32 0.0, %v328_v44  ;;  %v1572_v61 = vsel %vm331_vm4, %v328_v44, %v1543_v45  ;;  %v338_v4 = vmul.f32 %v1543_v45, %v1513_v26 }
  0xc0   : > { %v337_v2 = vmul.f32 %v1572_v61, %v1510_v25 }
  0xc1   : > { %471 = vrot.lane.b32.xlu1 %v336_v49, %s1318_s12  ;;  %1135 = vrot.lane.b32.xlu0 %v1134_v50, %s1314_s19 }
  0xc2   : > { %v351_v56 = vpop.permute.xlu0 %350  ;;  %v1565_v57 = vpop.permute.xlu1 %352  ;;  %v1154_v12 = vpack.i.bf16 %v338_v4, %v337_v2 }
  0xc3   : > { %v1578_v63 = vsel %vm354_vm5, %v351_v56, %v1565_v57  ;;  %v361_v7 = vmul.f32 %v1565_v57, %v1513_v26  ;;  %v359_v8 = vmul.f32 0.0, %v351_v56 }
  0xc4   : > { %v360_v9 = vmul.f32 %v1578_v63, %v1510_v25 }
  0xc5   : > { %281 = vrot.lane.b32.xlu1 %v276_v53, %s1313_s17  ;;  %1140 = vrot.lane.b32.xlu0 %v1139_v60, %s1315_s29 }
  0xc6   : > { %v1580_v0 = vpop.permute.xlu1 %306  ;;  %v305_v1 = vpop.permute.xlu0 %304  ;;  %v1159_v13 = vpack.i.bf16 %v361_v7, %v360_v9 }
  0xc7   : > { %v1588_v6 = vsel %vm308_vm6, %v305_v1, %v1580_v0  ;;  %v315_v10 = vmul.f32 %v1580_v0, %v1513_v26  ;;  %v313_v16 = vmul.f32 0.0, %v305_v1 }
  0xc8   : > { %v314_v11 = vmul.f32 %v1588_v6, %v1510_v25 }
  0xc9   : > { %1145 = vrot.lane.b32.xlu0 %v1144_v62, %s1316_s16  ;;  %1150 = vrot.lane.b32.xlu1 %v1149_v5, %s1317_s18 }
  0xca   : > { %v1164_v14 = vpack.i.bf16 %v315_v10, %v314_v11  ;;  %v1131_v18 = vpop.permute.xlu0 %1130 }
  0xcb   : > { %v1132_v35 = vunpack.i.l.bf16 %v1131_v18  ;;  %v1133_v60 = vunpack.i.h.bf16 %v1131_v18 }
  0xcd   : > { %486 = vrot.lane.b32.xlu0 %v359_v8, %s1312_s15  ;;  %1155 = vrot.lane.b32.xlu1 %v1154_v12, %s1318_s12 }
  0xd1   : > { %1160 = vrot.lane.b32.xlu0 %v1159_v13, %s1312_s15  ;;  %1165 = vrot.lane.b32.xlu1 %v1164_v14, %s1311_s14  ;;  %v503_v14 = vsel %vm285_vm11, %v1132_v35, %v1133_v60 }
  0xd5   : > { %283 = vrot.lane.b32.xlu0 %v280_v15, %s1313_s17 }
  0xd9   : > { %457 = vrot.lane.b32.xlu0 %v313_v16, %s1311_s14 }
 0x127   : > { %v1607_v17 = vpop.permute.xlu1 %559 }
 0x12b   : > { %v1609_v19 = vpop.permute.xlu1 %529 }
 0x12f   : > { %v1611_v20 = vpop.permute.xlu1 %544  ;;  %v1613_v21 = vpop.permute.xlu0 %514 }
 0x133   : > { %v1615_v22 = vpop.permute.xlu1 %471  ;;  %v1136_v23 = vpop.permute.xlu0 %1135 }
 0x134   : > { %v1137_v3 = vunpack.i.l.bf16 %v1136_v23  ;;  %v1138_v31 = vunpack.i.h.bf16 %v1136_v23 }
 0x136   : > { %v580_v24 = vpack.c.bf16 %v1137_v3, %v1137_v3  ;;  %v562_v47 = vsel %vm561_vm7, %v1137_v3, %v1138_v31  ;;  %v563_v49 = vsel %vm561_vm7, %v1138_v31, %v1607_v17 }
 0x137   : > { %v1617_v27 = vpop.permute.xlu1 %281  ;;  %v1141_v30 = vpop.permute.xlu0 %1140  ;;  %v581_v52 = vpack.c.bf16 %v562_v47, %v562_v47  ;;  %v582_v53 = vpack.c.bf16 %v563_v49, %v563_v49 }
 0x138   : > { %628 = vrot.lane.b32.xlu1 %v580_v24, %s1306_s8  ;;  %v1142_v37 = vunpack.i.l.bf16 %v1141_v30  ;;  %v1143_v50 = vunpack.i.h.bf16 %v1141_v30  ;;  %v1668_v49 = vmul.f32 0.0, %v1617_v27 }
 0x13a   : > { %v532_v62 = vsel %vm531_vm9, %v1142_v37, %v1143_v50  ;;  %v533_v1 = vsel %vm531_vm9, %v1143_v50, %v1609_v19 }
 0x13b   : > { %v1146_v32 = vpop.permute.xlu0 %1145  ;;  %v1151_v34 = vpop.permute.xlu1 %1150 }
 0x13c   : > { %v1147_v39 = vunpack.i.l.bf16 %v1146_v32  ;;  %v1152_v40 = vunpack.i.l.bf16 %v1151_v34  ;;  %v1148_v44 = vunpack.i.h.bf16 %v1146_v32  ;;  %v1153_v54 = vunpack.i.h.bf16 %v1151_v34 }
 0x13e   : > { %v577_v41 = vpack.c.bf16 %v1147_v39, %v1142_v37  ;;  %v574_v43 = vpack.c.bf16 %v1152_v40, %v1132_v35  ;;  %v547_v56 = vsel %vm546_vm8, %v1147_v39, %v1148_v44  ;;  %v548_v58 = vsel %vm546_vm8, %v1148_v44, %v1611_v20 }
 0x13f   : > { %v1620_v46 = vpop.permute.xlu0 %486  ;;  %v1156_v59 = vpop.permute.xlu1 %1155  ;;  %v578_v2 = vpack.c.bf16 %v547_v56, %v532_v62  ;;  %v579_v4 = vpack.c.bf16 %v548_v58, %v533_v1  ;;  %v518_v8 = vsel %vm516_vm10, %v1153_v54, %v1613_v21  ;;  %v517_v9 = vsel %vm516_vm10, %v1152_v40, %v1153_v54 }
 0x140   : > { %622 = vrot.lane.b32.xlu0 %v577_v41, %s1306_s8  ;;  %616 = vrot.lane.b32.xlu1 %v574_v43, %s1306_s8  ;;  %v1158_v12 = vunpack.i.h.bf16 %v1156_v59  ;;  %v1157_v13 = vunpack.i.l.bf16 %v1156_v59  ;;  %v576_v15 = vpack.c.bf16 %v518_v8, %v1133_v60  ;;  %v575_v16 = vpack.c.bf16 %v517_v9, %v503_v14 }
 0x141   : > { %v1319_v35 = vmov 0  }
 0x142   : > { %v479_v30 = vsel %vm477_vm12, %v1157_v13, %v1158_v12  ;;  %696 = vmatprep.mubr.bf16.mxu0 %v1319_v35  ;;  %1169 = vset.pattern.permute.xlu0 %v1319_v35 }
 0x143   : > { %v1161_v55 = vpop.permute.xlu0 %1160  ;;  %v1166_v11 = vpop.permute.xlu1 %1165  ;;  %940 = vmatprep.mubr.bf16.mxu1 %v1319_v35  ;;  %1210 = vset.pattern.permute.xlu1 %v1319_v35 }
 0x144   : > { %630 = vrot.lane.b32.xlu0 %v581_v52, %s1306_s8  ;;  %632 = vrot.lane.b32.xlu1 %v582_v53, %s1306_s8  ;;  %v1163_v5 = vunpack.i.h.bf16 %v1161_v55  ;;  %v1162_v7 = vunpack.i.l.bf16 %v1161_v55  ;;  %v1168_v23 = vunpack.i.h.bf16 %v1166_v11  ;;  %v1167_v3 = vunpack.i.l.bf16 %v1166_v11 }
 0x146   : > { %v493_v24 = vsel %vm308_vm6, %v1162_v7, %v1163_v5  ;;  %v573_v31 = vpack.c.bf16 %v1163_v5, %v1158_v12  ;;  %v492_v37 = vsel %vm308_vm6, %v1620_v46, %v1162_v7  ;;  %v464_v39 = vsel %vm354_vm5, %v1167_v3, %v1168_v23 }
 0x147   : > { %v1638_v10 = vpop.permute.xlu0 %283  ;;  %v572_v34 = vpack.c.bf16 %v493_v24, %v479_v30 }
 0x148   : > { %624 = vrot.lane.b32.xlu0 %v578_v2, %s1306_s8  ;;  %626 = vrot.lane.b32.xlu1 %v579_v4, %s1306_s8  ;;  %v1646_v18 = vsel %vm285_vm11, %v1617_v27, %v1638_v10  ;;  %v292_v41 = vmul.f32 %v1638_v10, %v1513_v26  ;;  %v583_v26 = vld [vmem:[%s1842_s2] sm:$0xff] }
 0x149   : > { %v291_v32 = vmul.f32 %v1646_v18, %v1510_v25  ;;  %v478_v25 = vsel %vm477_vm12, %v1615_v22, %v1157_v13 }
 0x14a   : > { %v571_v43 = vpack.c.bf16 %v492_v37, %v478_v25  ;;  %v570_v50 = vpack.c.bf16 %v1168_v23, %v292_v41 }
 0x14b   : > { %v1657_v40 = vpop.permute.xlu0 %457  ;;  %v569_v44 = vpack.c.bf16 %v464_v39, %v291_v32 }
 0x14c   : > { %620 = vrot.lane.b32.xlu0 %v576_v15, %s1306_s8  ;;  %618 = vrot.lane.b32.xlu1 %v575_v16, %s1306_s8  ;;  %v463_v47 = vsel %vm354_vm5, %v1657_v40, %v1167_v3 }
 0x14d   : > { %v568_v52 = vpack.c.bf16 %v463_v47, %v1668_v49 }
 0x150   : > { %612 = vrot.lane.b32.xlu0 %v572_v34, %s1306_s8  ;;  %614 = vrot.lane.b32.xlu1 %v573_v31, %s1306_s8  ;;  %v567_v31 = vld [vmem:[%s1841_s1] sm:$0xf] }
 0x154   : > { %610 = vrot.lane.b32.xlu0 %v571_v43, %s1306_s8  ;;  %606 = vrot.lane.b32.xlu1 %v569_v44, %s1306_s8 }
 0x158   : > { %608 = vrot.lane.b32.xlu0 %v570_v50, %s1306_s8  ;;  %604 = vrot.lane.b32.xlu1 %v568_v52, %s1306_s8 }
 0x15c   : > { %586 = vperm.xlu0 %1169, %v583_v26  }
 0x1aa   : > { %v629_v53 = vpop.permute.xlu1 %628 }
 0x1b2   : > { %v623_v54 = vpop.permute.xlu0 %622  ;;  %v617_v27 = vpop.permute.xlu1 %616 }
 0x1b6   : > { %v631_v55 = vpop.permute.xlu0 %630  ;;  %v633_v56 = vpop.permute.xlu1 %632 }
 0x1b7   : > { %v644_v58 = vsel %vm446_vm0, %v631_v55, %v633_v56  ;;  %v643_v59 = vsel %vm446_vm0, %v629_v53, %v631_v55 }
 0x1b8   : > { %1058 = vmatprep.subr.msk.bf16.mxu0 %vm657_vm13, %v644_v58  ;;  %v659_v60 = vsel %vm657_vm13, %v643_v59, 0 }
 0x1b9   : > { %671 = vmatpush1.bf16.msra.mxu0 %v659_v60 }
 0x1ba   : > { %v625_v62 = vpop.permute.xlu0 %624  ;;  %v627_v1 = vpop.permute.xlu1 %626 }
 0x1bb   : > { %v642_v2 = vsel %vm446_vm0, %v625_v62, %v627_v1  ;;  %v641_v4 = vsel %vm446_vm0, %v623_v54, %v625_v62 }
 0x1bc   : > { %672 = vmatprep.subr.bf16.mxu0 %v642_v2 }
 0x1bd   : > { %673 = vmatpush1.bf16.msra.mxu0 %v641_v4 }
 0x1be   : > { %v621_v5 = vpop.permute.xlu0 %620  ;;  %v619_v7 = vpop.permute.xlu1 %618 }
 0x1bf   : > { %v640_v8 = vsel %vm446_vm0, %v619_v7, %v621_v5  ;;  %v639_v9 = vsel %vm446_vm0, %v617_v27, %v619_v7 }
 0x1c0   : > { %674 = vmatprep.subr.bf16.mxu0 %v640_v8 }
 0x1c1   : > { %675 = vmatpush1.bf16.msra.mxu0 %v639_v9 }
 0x1c2   : > { %v613_v11 = vpop.permute.xlu0 %612  ;;  %v615_v12 = vpop.permute.xlu1 %614 }
 0x1c3   : > { %v638_v13 = vsel %vm446_vm0, %v613_v11, %v615_v12 }
 0x1c4   : > { %676 = vmatprep.subr.bf16.mxu0 %v638_v13 }
 0x1c6   : > { %v611_v14 = vpop.permute.xlu0 %610  ;;  %v607_v15 = vpop.permute.xlu1 %606 }
 0x1c7   : > { %v637_v16 = vsel %vm446_vm0, %v611_v14, %v613_v11 }
 0x1c8   : > { %677 = vmatpush1.bf16.msra.mxu0 %v637_v16 }
 0x1ca   : > { %v609_v23 = vpop.permute.xlu0 %608  ;;  %v605_v3 = vpop.permute.xlu1 %604 }
 0x1cb   : > { %v636_v24 = vsel %vm446_vm0, %v607_v15, %v609_v23  ;;  %v635_v30 = vsel %vm446_vm0, %v605_v3, %v607_v15 }
 0x1cc   : > { %678 = vmatprep.subr.bf16.mxu0 %v636_v24 }
 0x1cd   : > { %679 = vmatpush1.bf16.msra.mxu0 %v635_v30 }
 0x1d0   : > { %1059 = vmatmul.mubr.msk.bf16.vlgmr.msra.gmra.mxu0 %vm653_vm14, %v567_v31 }
 0x1d7   : > { %v587_v32 = vpop.permute.xlu0 %586 }
 0x290   : > { %v698_v34 = vpop.f32.mrf.mxu0 }
 0x291   : > { %v699_v35 = vadd.f32 %v698_v34, %v587_v32 }
 0x292   : > { %v700_v37 = vpop.f32.mrf.mxu0 }
 0x293   : > { %vm705_vm15 = vcmp.ge.f32.partialorder %v699_v35, 0.0  ;;  %v707_v39 = vmul.f32 0.01, %v699_v35  ;;  %v701_v25 = vadd.f32 %v700_v37, %v587_v32 }
 0x294   : > { %v702_v41 = vpop.f32.mrf.mxu0 }
 0x295   : > { %v1694_v43 = vsel %vm705_vm15, %v699_v35, %v707_v39  ;;  %vm706_vm1 = vcmp.ge.f32.partialorder %v701_v25, 0.0  ;;  %v708_v44 = vmul.f32 0.01, %v701_v25 }
 0x296   : > { %v703_v47 = vpop.f32.mrf.mxu0  ;;  %v725_v52 = vmul.f32 %v1694_v43, %v1520_v28  ;;  %v723_v53 = vmul.f32 %v1694_v43, %v1525_v33  ;;  %v721_v28 = vmul.f32 %v1694_v43, %v1522_v29  ;;  %v719_v33 = vmul.f32 %v1694_v43, %v1532_v38 }
 0x297   : > { %v1696_v50 = vsel %vm706_vm1, %v701_v25, %v708_v44  ;;  %v715_v38 = vmul.f32 %v1694_v43, %v1572_v61 }
 0x298   : > { %v726_v26 = vmul.f32 %v1696_v50, %v1529_v36  ;;  %v724_v54 = vmul.f32 %v1696_v50, %v1551_v48  ;;  %v722_v56 = vmul.f32 %v1696_v50, %v1537_v42  ;;  %v720_v58 = vmul.f32 %v1696_v50, %v1554_v51 }
 0x299   : > { %v718_v59 = vmul.f32 %v1696_v50, %v1565_v57  ;;  %v717_v42 = vmul.f32 %v1694_v43, %v1578_v63  ;;  %v1180_v51 = vpack.i.bf16 %v1696_v50, %v1694_v43  ;;  %v716_v29 = vmul.f32 %v1696_v50, %v1543_v45 }
 0x29a   : > { %v1170_v27 = vpack.i.bf16 %v726_v26, %v725_v52  ;;  %v1185_v55 = vpack.i.bf16 %v724_v54, %v723_v53  ;;  %v1175_v36 = vpack.i.bf16 %v722_v56, %v721_v28  ;;  %v1190_v48 = vpack.i.bf16 %v720_v58, %v719_v33 }
 0x29b   : > { %v1200_v60 = vpack.i.bf16 %v718_v59, %v717_v42  ;;  %v1195_v57 = vpack.i.bf16 %v716_v29, %v715_v38  ;;  %v714_v62 = vmul.f32 %v1696_v50, %v1580_v0  ;;  %v713_v63 = vmul.f32 %v1694_v43, %v1588_v6 }
 0x29c   : > { %1171 = vrot.lane.b32.xlu1 %v1170_v27, %s1314_s19  ;;  %1186 = vrot.lane.b32.xlu0 %v1185_v55, %s1316_s16  ;;  %s1068_s19 = sshll.u32 %s1377_s25, 8 }
 0x29d   : > { %v1205_v1 = vpack.i.bf16 %v714_v62, %v713_v63  ;;  %s1803_s13 = scalar_lea.hbm %s1846_s6, %s1068_s19 }
 0x2a0   : > { %1176 = vrot.lane.b32.xlu1 %v1175_v36, %s1315_s29  ;;  %1191 = vrot.lane.b32.xlu0 %v1190_v48, %s1317_s18  ;;  %s267_s29 = scalar_lea.vmem [#allocation5], %s1049_s28  ;;  %s1320_s28 = smov [#allocation5]  }
 0x2a1   : > { %s972_s16 = sshll.u32 %s267_s29, 4  ;;  %s1243_s20 = sshll.u32 %s1320_s28, 4  ;;  %s973_s16 = int_to_ptr.vmem [resolvable:$true] %s972_s16  ;;  %s1244_s20 = int_to_ptr.vmem [resolvable:$false] %s1243_s20 }
 0x2a2   : > { %s1239_s25 = scalar_lea.vmem %s973_s16, 256  ;;  %s1245_s7 = scalar_lea.vmem %s1244_s20, 512 }
 0x2a3   : > { %p1240_p11 = scmp.ne.s32.totalorder %s973_s16, %s1239_s25  ;;  %p1246_p3 = scmp.lt.s32.totalorder %s973_s16, %s1244_s20 }
 0x2a4   : > { %1181 = vrot.lane.b32.xlu1 %v1180_v51, %s1313_s17  ;;  %1201 = vrot.lane.b32.xlu0 %v1200_v60, %s1312_s15  ;;  %v711_v60 = vmul.f32 %v1694_v43, %v1646_v18  ;;  %p1247_p5 = scmp.lt.s32.totalorder %s1245_s7, %s1239_s25 }
 0x2a5   : > { %p1241_p13 = pnand %p1240_p11, %p1857_p12 }
 0x2a6   : > { %p1248_p8 = por %p1247_p5, %p1246_p3 }
 0x2a7   : > { %p1242_p1 = pneg %p1241_p13 }
 0x2a8   : > { %1196 = vrot.lane.b32.xlu1 %v1195_v57, %s1318_s12 }
 0x2a9   : > { %p1249_p10 = pnand %p1248_p8, %p1242_p1 }
 0x2ac   : > { %1206 = vrot.lane.b32.xlu1 %v1205_v1, %s1311_s14 }
 0x30e   : > { %v1172_v45 = vpop.permute.xlu1 %1171  ;;  %v1187_v2 = vpop.permute.xlu0 %1186 }
 0x30f   : > { %v1173_v4 = vunpack.i.l.bf16 %v1172_v45  ;;  %v1174_v7 = vunpack.i.h.bf16 %v1172_v45  ;;  %v1188_v9 = vunpack.i.l.bf16 %v1187_v2  ;;  %v1189_v16 = vunpack.i.h.bf16 %v1187_v2 }
 0x311   : > { %v827_v5 = vpack.c.bf16 %v1173_v4, %v1173_v4  ;;  %v809_v14 = vsel %vm561_vm7, %v1173_v4, %v1174_v7  ;;  %v810_v31 = vsel %vm561_vm7, %v1174_v7, %v1607_v17  ;;  %v798_v37 = vsel %vm546_vm8, %v1188_v9, %v1189_v16 }
 0x312   : > { %v1177_v8 = vpop.permute.xlu1 %1176  ;;  %v1192_v11 = vpop.permute.xlu0 %1191  ;;  %v828_v24 = vpack.c.bf16 %v809_v14, %v809_v14  ;;  %v829_v39 = vpack.c.bf16 %v810_v31, %v810_v31  ;;  %v799_v52 = vsel %vm546_vm8, %v1189_v16, %v1611_v20 }
 0x313   : > { %v1178_v61 = vunpack.i.l.bf16 %v1177_v8  ;;  %875 = vrot.lane.b32.xlu0 %v827_v5, %s1306_s8  ;;  %v1179_v12 = vunpack.i.h.bf16 %v1177_v8  ;;  %v1193_v6 = vunpack.i.l.bf16 %v1192_v11  ;;  %v1194_v17 = vunpack.i.h.bf16 %v1192_v11 }
 0x315   : > { %v824_v0 = vpack.c.bf16 %v1188_v9, %v1178_v61  ;;  %v787_v32 = vsel %vm531_vm9, %v1178_v61, %v1179_v12  ;;  %v788_v44 = vsel %vm531_vm9, %v1179_v12, %v1609_v19  ;;  %v776_v58 = vsel %vm516_vm10, %v1193_v6, %v1194_v17 }
 0x316   : > { %v1182_v13 = vpop.permute.xlu1 %1181  ;;  %v1202_v3 = vpop.permute.xlu0 %1201  ;;  %v825_v25 = vpack.c.bf16 %v798_v37, %v787_v32  ;;  %v826_v53 = vpack.c.bf16 %v799_v52, %v788_v44 }
 0x317   : > { %v1183_v15 = vunpack.i.l.bf16 %v1182_v13  ;;  %869 = vrot.lane.b32.xlu1 %v824_v0, %s1306_s8  ;;  %v1203_v35 = vunpack.i.l.bf16 %v1202_v3  ;;  %v1184_v41 = vunpack.i.h.bf16 %v1182_v13  ;;  %v1204_v56 = vunpack.i.h.bf16 %v1202_v3 }
 0x319   : > { %v821_v23 = vpack.c.bf16 %v1193_v6, %v1183_v15  ;;  %v755_v26 = vsel %vm308_vm6, %v1620_v46, %v1203_v35  ;;  %v766_v55 = vsel %vm285_vm11, %v1183_v15, %v1184_v41  ;;  %v756_v48 = vsel %vm308_vm6, %v1203_v35, %v1204_v56 }
 0x31a   : > { %v1197_v30 = vpop.permute.xlu1 %1196  ;;  %v822_v28 = vpack.c.bf16 %v776_v58, %v766_v55 }
 0x31b   : > { %v1198_v34 = vunpack.i.l.bf16 %v1197_v30  ;;  %863 = vrot.lane.b32.xlu0 %v821_v23, %s1306_s8  ;;  %877 = vrot.lane.b32.xlu1 %v828_v24, %s1306_s8  ;;  %v1199_v27 = vunpack.i.h.bf16 %v1197_v30  ;;  %v814_v30 = vld [vmem:[%s1843_s3] sm:$0xf] }
 0x31d   : > { %v744_v47 = vsel %vm477_vm12, %v1615_v22, %v1198_v34  ;;  %v777_v22 = vsel %vm516_vm10, %v1194_v17, %v1613_v21  ;;  %v745_v36 = vsel %vm477_vm12, %v1198_v34, %v1199_v27  ;;  %v820_v59 = vpack.c.bf16 %v1204_v56, %v1199_v27 }
 0x31e   : > { %v818_v54 = vpack.c.bf16 %v755_v26, %v744_v47  ;;  %v1207_v19 = vpop.permute.xlu1 %1206  ;;  %v823_v20 = vpack.c.bf16 %v777_v22, %v1184_v41  ;;  %v819_v42 = vpack.c.bf16 %v756_v48, %v745_v36  ;;  %v712_v21 = vmul.f32 %v1696_v50, %v1638_v10  ;;  %v830_v10 = vld [vmem:[%s1844_s4] sm:$0xff] }
 0x31f   : > { %879 = vrot.lane.b32.xlu0 %v829_v39, %s1306_s8  ;;  %871 = vrot.lane.b32.xlu1 %v825_v25, %s1306_s8  ;;  %v1209_v33 = vunpack.i.h.bf16 %v1207_v19  ;;  %v1208_v46 = vunpack.i.l.bf16 %v1207_v19 }
 0x321   : > { %v734_v51 = vsel %vm354_vm5, %v1208_v46, %v1209_v33  ;;  %v817_v29 = vpack.c.bf16 %v1209_v33, %v712_v21  ;;  %v733_v57 = vsel %vm354_vm5, %v1657_v40, %v1208_v46 }
 0x322   : > { %v816_v38 = vpack.c.bf16 %v734_v51, %v711_v60  ;;  %v815_v50 = vpack.c.bf16 %v733_v57, %v1668_v49 }
 0x323   : > { %873 = vrot.lane.b32.xlu0 %v826_v53, %s1306_s8  ;;  %857 = vrot.lane.b32.xlu1 %v818_v54, %s1306_s8 }
 0x327   : > { %865 = vrot.lane.b32.xlu0 %v822_v28, %s1306_s8  ;;  %867 = vrot.lane.b32.xlu1 %v823_v20, %s1306_s8 }
 0x32b   : > { %861 = vrot.lane.b32.xlu0 %v820_v59, %s1306_s8  ;;  %859 = vrot.lane.b32.xlu1 %v819_v42, %s1306_s8 }
 0x32f   : > { %855 = vrot.lane.b32.xlu1 %v817_v29, %s1306_s8  ;;  %853 = vrot.lane.b32.xlu0 %v816_v38, %s1306_s8 }
 0x333   : > { %851 = vrot.lane.b32.xlu0 %v815_v50, %s1306_s8  ;;  %833 = vperm.xlu1 %1210, %v830_v10  }
 0x385   : > { %v876_v62 = vpop.permute.xlu0 %875 }
 0x389   : > { %v870_v18 = vpop.permute.xlu1 %869 }
 0x38d   : > { %v864_v43 = vpop.permute.xlu0 %863  ;;  %v878_v63 = vpop.permute.xlu1 %877 }
 0x38e   : > { %v889_v1 = vsel %vm446_vm0, %v876_v62, %v878_v63 }
 0x38f   : > { %v903_v4 = vsel %vm657_vm13, %v889_v1, 0 }
 0x391   : > { %v880_v40 = vpop.permute.xlu0 %879  ;;  %v872_v45 = vpop.permute.xlu1 %871 }
 0x392   : > { %v890_v2 = vsel %vm446_vm0, %v878_v63, %v880_v40  ;;  %v887_v8 = vsel %vm446_vm0, %v870_v18, %v872_v45 }
 0x393   : > { %1060 = vmatprep.subr.msk.bf16.mxu1 %vm657_vm13, %v890_v2 }
 0x394   : > { %915 = vmatpush1.bf16.msra.mxu1 %v903_v4 }
 0x395   : > { %v874_v5 = vpop.permute.xlu0 %873  ;;  %v858_v49 = vpop.permute.xlu1 %857 }
 0x396   : > { %v888_v7 = vsel %vm446_vm0, %v872_v45, %v874_v5 }
 0x397   : > { %916 = vmatprep.subr.bf16.mxu1 %v888_v7 }
 0x398   : > { %917 = vmatpush1.bf16.msra.mxu1 %v887_v8 }
 0x399   : > { %v866_v9 = vpop.permute.xlu0 %865  ;;  %v868_v61 = vpop.permute.xlu1 %867 }
 0x39a   : > { %v886_v11 = vsel %vm446_vm0, %v866_v9, %v868_v61  ;;  %v885_v0 = vsel %vm446_vm0, %v864_v43, %v866_v9 }
 0x39b   : > { %918 = vmatprep.subr.bf16.mxu1 %v886_v11 }
 0x39c   : > { %919 = vmatpush1.bf16.msra.mxu1 %v885_v0 }
 0x39d   : > { %v862_v12 = vpop.permute.xlu0 %861  ;;  %v860_v13 = vpop.permute.xlu1 %859 }
 0x39e   : > { %v884_v14 = vsel %vm446_vm0, %v860_v13, %v862_v12  ;;  %v883_v6 = vsel %vm446_vm0, %v858_v49, %v860_v13 }
 0x39f   : > { %920 = vmatprep.subr.bf16.mxu1 %v884_v14 }
 0x3a0   : > { %921 = vmatpush1.bf16.msra.mxu1 %v883_v6 }
 0x3a1   : > { %v856_v15 = vpop.permute.xlu1 %855  ;;  %v854_v16 = vpop.permute.xlu0 %853 }
 0x3a2   : > { %v882_v23 = vsel %vm446_vm0, %v854_v16, %v856_v15 }
 0x3a3   : > { %922 = vmatprep.subr.bf16.mxu1 %v882_v23 }
 0x3a5   : > { %v852_v3 = vpop.permute.xlu0 %851 }
 0x3a6   : > { %v881_v24 = vsel %vm446_vm0, %v852_v3, %v854_v16 }
 0x3a7   : > { %923 = vmatpush1.bf16.msra.mxu1 %v881_v24 }
 0x3aa   : > { %1061 = vmatmul.mubr.msk.bf16.vlgmr.msra.gmra.mxu1 %vm653_vm14, %v814_v30 }
 0x3ae   : > { %v834_v31 = vpop.permute.xlu1 %833 }
 0x46a   : > { %v942_v32 = vpop.f32.mrf.mxu1 }
 0x46b   : > { %v943_v34 = vadd.f32 %v942_v32, %v834_v31 }
 0x46c   : > { %v944_v35 = vpop.f32.mrf.mxu1 }
 0x46d   : > { %vm949_vm2 = vcmp.ge.f32.partialorder %v943_v34, 0.0  ;;  %v951_v37 = vmul.f32 0.01, %v943_v34  ;;  %v945_v39 = vadd.f32 %v944_v35, %v834_v31 }
 0x46e   : > { %v946_v25 = vpop.f32.mrf.mxu1 }
 0x46f   : > { %v953_v41 = vsel %vm949_vm2, %v943_v34, %v951_v37  ;;  %vm950_vm0 = vcmp.ge.f32.partialorder %v945_v39, 0.0  ;;  %v952_v44 = vmul.f32 0.01, %v945_v39 }
 0x470   : > { %955 = vst [vmem:[%s267_s29] sm:$0xff] %v953_v41  ;;  %v947_v47 = vpop.f32.mrf.mxu1 }
 0x471   : > { %v954_v17 = vsel %vm950_vm0, %v945_v39, %v952_v44 }
 0x472   : > { %956 = vst [vmem:[%s267_s29 + $0x8] sm:$0xff] %v954_v17 }
 0x473   : > { %1252 = shalt.err (!%p1249_p10)
}
 0x474   : > { %s1253_s14 = scalar_lea.hbm %s1803_s13, 256  ;;  %s1257_s8 = scalar_lea.hbm %s1846_s6, 512 }
 0x475   : > { %p1254_p2 = scmp.ne.s32.totalorder %s1803_s13, %s1253_s14  ;;  %p1258_p7 = scmp.lt.s32.totalorder %s1803_s13, %s1846_s6 }
 0x476   : > { %p1259_p0 = scmp.lt.s32.totalorder %s1257_s8, %s1253_s14 }
 0x477   : > { %p1255_p4 = pnand %p1254_p2, %p1857_p12 }
 0x478   : > { %p1260_p6 = por %p1259_p0, %p1258_p7 }
 0x479   : > { %p1256_p9 = pneg %p1255_p4 }
 0x47b   : > { %p1261_p11 = pnand %p1260_p6, %p1256_p9 }
 0x47d   : > { %1264 = shalt.err (!%p1261_p11)
}
 0x47e   : > { %1071 = dma.vmem_to_hbm [thread:$0]  (%p1857_p12), %s973_s16, 256, %s1803_s13, %s958_s11  }
 0x47f PF: > { %s984_s29 = sand.u32 1, %s1291_s21   ;;  %p1858_p13 = scmp.ne.s32.totalorder %s1852_s10, 0 }
 0x480   : > { %p1859_p1 = scmp.ge.s32.totalorder %s1303_s24, 2  ;;  %s985_s18 = scalar_lea.sflag [#allocation4], %s984_s29 }
 0x482   : > { %p1078_p3 = pnand %p1859_p1, %p1858_p13 }
 0x484   : > { %p1079_p5 = pneg %p1078_p3 }
 0x486   : > { %1286 = dma.done.wait (%p1079_p5), %s985_s18, 256  }
 0x487   : > { %1288 = vsyncadd (%p1079_p5), %s985_s18, 4294967040  ;;  %p19_p8 = scmp.ge.s32.totalorder %s1381_s27, 4   ;;  %s1860_s21 = smov %s1295_s22 }
 0x488   : > { %s1861_s22 = smov %s1299_s23  ;;  %s1862_s23 = smov %s1393_s30 }
 0x489   : > { %s1863_s24 = smov %s1381_s27  ;;  %21 = sbr.rel (!%p19_p8) target bundleno = 5 (0x5), region = 96 }
 0x48e   :  { %990 = vsyncpa [#allocation3], 1 }
 0x48f   :  { %992 = vsyncpa [#allocation3 + $0x1], 1 }
 0x490   :  { %993 = vsyncpa [#allocation4], 1 }
 0x491   :  { %995 = vsyncpa [#allocation4 + $0x1], 1 }

</bundles_post_ra>
